<compile_context>
chip_gen: v5e
topology: v5e:2x2
jax: 0.10.0
libtpu: 0.0.40
codegen_flags: <defaults>
</compile_context>

<pallas_src>
import functools

import jax
import jax.numpy as jnp
from jax.experimental import pallas as pl
from jax.experimental.pallas import tpu as pltpu


_LANE = 128
_SUBLANE = 8


def _round_up(x, m):
    return ((x + m - 1) // m) * m


@functools.lru_cache(maxsize=None)
def _vmem_limit_bytes():
    """Generation-aware scoped-VMEM budget (~3/4 of physical VMEM)."""
    try:
        cap = int(pltpu.get_tpu_info().vmem_capacity_bytes)
    except Exception:
        cap = 64 * 1024 * 1024  # conservative fallback (v7x-sized VMEM)
    return max(32 * 1024 * 1024, (cap * 3) // 4)


def _max_tile():
    # 1024-tiles on 128 MiB parts (v5e/v6e), 512 on 64 MiB parts (v7x).
    return 1024 if _vmem_limit_bytes() >= 80 * 1024 * 1024 else 512


def _pick_tile(n, cap):
    # n is always a multiple of 128 here; prefer big tiles (fewer grid steps).
    for t in (1024, 512, 256, 128):
        if t <= cap and n % t == 0:
            return t
    return n


def _pad2d(a, rows, cols):
    return jnp.pad(a, ((0, rows - a.shape[0]), (0, cols - a.shape[1])))


# ----------------------------------------------------------------------------
# Stage 1: XW = X @ W   (tiled matmul, bf16 inputs, f32 accumulation)
# ----------------------------------------------------------------------------
def _xw_kernel(x_ref, w_ref, o_ref, acc_ref):
    @pl.when(pl.program_id(2) == 0)
    def _():
        acc_ref[...] = jnp.zeros_like(acc_ref)

    acc_ref[...] += jnp.dot(
        x_ref[...], w_ref[...], preferred_element_type=jnp.float32
    )

    @pl.when(pl.program_id(2) == pl.num_programs(2) - 1)
    def _():
        o_ref[...] = acc_ref[...].astype(o_ref.dtype)


def _xw_matmul(x_bf, w_bf):
    n_p, f_p = x_bf.shape
    h_p = w_bf.shape[1]
    cap = _max_tile()
    tm, tn, tk = _pick_tile(n_p, cap), _pick_tile(h_p, cap), _pick_tile(f_p, cap)
    return pl.pallas_call(
        _xw_kernel,
        out_shape=jax.ShapeDtypeStruct((n_p, h_p), jnp.bfloat16),
        grid=(n_p // tm, h_p // tn, f_p // tk),
        in_specs=[
            pl.BlockSpec((tm, tk), lambda i, j, k: (i, k)),
            pl.BlockSpec((tk, tn), lambda i, j, k: (k, j)),
        ],
        out_specs=pl.BlockSpec((tm, tn), lambda i, j, k: (i, j)),
        scratch_shapes=[pltpu.VMEM((tm, tn), jnp.float32)],
        compiler_params=pltpu.CompilerParams(
            dimension_semantics=("parallel", "parallel", "arbitrary"),
            vmem_limit_bytes=_vmem_limit_bytes(),
        ),
    )(x_bf, w_bf)


# ----------------------------------------------------------------------------
# Stage 2: fused  relu(A_hat @ XW + b)  ->  partial  P @ h  per row tile
# ----------------------------------------------------------------------------
def _make_agg_pool_kernel(xw_resident, tk):
    def kernel(occ_ref, a_ref, xw_ref, b_ref, p_ref, o_ref, acc_ref):
        i = pl.program_id(0)
        k = pl.program_id(1)
        nk = pl.num_programs(1)

        # Zero the per-row-tile accumulator at the start of each contraction.
        @pl.when(k == 0)
        def _():
            acc_ref[...] = jnp.zeros_like(acc_ref)

        # Skip the MXU work for adjacency tiles with no edges (occupancy is
        # scalar-prefetched into SMEM).  The (all-zero) A tile is still DMA'd;
        # see the block-sparse TODO at the top of the file.
        @pl.when(occ_ref[i, k] != 0)
        def _():
            if xw_resident:
                # Whole XW lives in VMEM; slice the contraction chunk locally.
                xw_chunk = xw_ref[pl.ds(pl.multiple_of(k * tk, tk), tk), :]
            else:
                xw_chunk = xw_ref[...]
            acc_ref[...] += jnp.dot(
                a_ref[...], xw_chunk, preferred_element_type=jnp.float32
            )

        # Epilogue on the finished row tile: bias + relu (f32), then this row
        # tile's partial pooled contribution.  Pooling stays f32 (Bp is tiny)
        # for accuracy; the partial block is indexed by i (no cross-i
        # accumulation), so the i axis can shard across TensorCores.
        @pl.when(k == nk - 1)
        def _():
            h = jnp.maximum(acc_ref[...] + b_ref[...], 0.0)
            o_ref[0] = jnp.dot(p_ref[...], h, preferred_element_type=jnp.float32)

    return kernel


def _stage2_vmem_bytes(n_p, h_p, b_p, tm, tk, resident):
    bt = 2 * tm * tk * 2              # A_hat tiles, bf16, double-buffered
    if resident:
        bt += 2 * n_p * h_p * 2       # XW resident block (worst-case 2 buffers)
    else:
        bt += 2 * tk * h_p * 2        # streamed XW slab, double-buffered
    bt += 2 * 1 * h_p * 4             # bias
    bt += 2 * b_p * tm * 4            # pooling slab (f32), double-buffered
    bt += 2 * b_p * h_p * 4           # output block
    bt += tm * h_p * 4                # f32 accumulator scratch
    return bt


def _agg_pool(a_bf, xw_bf, b_f32, p_f32, occ, tm, tk):
    n_p = a_bf.shape[0]
    h_p = xw_bf.shape[1]
    b_p = p_f32.shape[0]
    n_i = n_p // tm
    n_k = n_p // tk
    vmem_limit = _vmem_limit_bytes()
    budget = (vmem_limit * 17) // 20  # ~85% of the scoped limit

    # Keep XW fully VMEM-resident whenever the whole Stage-2 footprint fits.
    resident = _stage2_vmem_bytes(n_p, h_p, b_p, tm, tk, True) <= budget

    # TODO(synk): pipeline_mode=pl.Buffered(3) on the A-tile spec (review item,
    # low-single-digit win) once verified against the deployed jax/Mosaic.
    a_spec = pl.BlockSpec((tm, tk), lambda i, k, occ: (i, k))
    if resident:
        xw_spec = pl.BlockSpec((n_p, h_p), lambda i, k, occ: (0, 0))
    else:
        xw_spec = pl.BlockSpec((tk, h_p), lambda i, k, occ: (k, 0))

    kernel = _make_agg_pool_kernel(resident, tk)
    return pl.pallas_call(
        kernel,
        out_shape=jax.ShapeDtypeStruct((n_i, b_p, h_p), jnp.float32),
        grid_spec=pltpu.PrefetchScalarGridSpec(
            num_scalar_prefetch=1,
            grid=(n_i, n_k),
            in_specs=[
                a_spec,                                            # A_hat tile
                xw_spec,                                           # XW
                pl.BlockSpec((1, h_p), lambda i, k, occ: (0, 0)),  # bias
                pl.BlockSpec((b_p, tm), lambda i, k, occ: (0, i)), # pool cols
            ],
            # Lane-dense padded partial output, one block per row tile i.
            out_specs=pl.BlockSpec((1, b_p, h_p), lambda i, k, occ: (i, 0, 0)),
            scratch_shapes=[pltpu.VMEM((tm, h_p), jnp.float32)],
        ),
        compiler_params=pltpu.CompilerParams(
            # i axis is independent now -> "parallel" (v7x megacore); k is the
            # reduction axis -> "arbitrary".
            dimension_semantics=("parallel", "arbitrary"),
            vmem_limit_bytes=vmem_limit,
        ),
    )(occ, a_bf, xw_bf, b_f32, p_f32)


# ----------------------------------------------------------------------------
# Glue: edge_index / batch -> dense padded operators (plain JAX, not hot path)
# ----------------------------------------------------------------------------
def _build_adjacency_padded(edge_index, num_nodes, n_pad, dtype):
    """Dense A + I, built padded, in `dtype`, with the self-loop fused into
    the same scatter (single pass, no f32 intermediate)."""
    src = edge_index[0].astype(jnp.int32)
    dst = edge_index[1].astype(jnp.int32)
    diag = jnp.arange(num_nodes, dtype=jnp.int32)
    rows = jnp.concatenate([dst, diag])  # message src -> dst lands in row dst
    cols = jnp.concatenate([src, diag])
    a = jnp.zeros((n_pad, n_pad), dtype=dtype)
    return a.at[rows, cols].set(1.0)


def _tile_occupancy(edge_index, num_nodes, tm, tk, n_i, n_k):
    """Per-(i,k) adjacency-tile occupancy, O(E) straight from edge_index."""
    src = edge_index[0].astype(jnp.int32)
    dst = edge_index[1].astype(jnp.int32)
    diag = jnp.arange(num_nodes, dtype=jnp.int32)
    rows = jnp.concatenate([dst, diag])
    cols = jnp.concatenate([src, diag])
    occ = jnp.zeros((n_i, n_k), dtype=jnp.int32)
    return occ.at[rows // tm, cols // tk].set(1)


def _build_mean_pool_padded(batch, num_graphs, num_nodes, b_pad, n_pad):
    """Row-normalized membership matrix [Bp, Np], kept in f32 (accuracy);
    padded nodes get weight 0 so zero-padding stays exact."""
    batch_p = jnp.full((n_pad,), -1, jnp.int32).at[:num_nodes].set(
        batch.astype(jnp.int32)
    )
    onehot = (batch_p[None, :] == jnp.arange(b_pad, dtype=jnp.int32)[:, None])
    onehot = onehot.astype(jnp.float32)
    counts = jnp.maximum(onehot.sum(axis=1, keepdims=True), 1.0)
    return onehot / counts


# ----------------------------------------------------------------------------
# Wrapper: pad / cast / run the two pipelined kernels / reduce & slice back
# ----------------------------------------------------------------------------
def gcn_forward_pallas(x, edge_index, batch, num_graphs, w, b):
    n, f = x.shape
    h_dim = w.shape[1]

    n_p = _round_up(n, _LANE)
    f_p = _round_up(f, _LANE)
    h_p = _round_up(h_dim, _LANE)
    b_p = _round_up(max(int(num_graphs), 1), _SUBLANE)

    cap = _max_tile()
    tm = _pick_tile(n_p, cap)
    tk = tm

    # Zero-padding is exact: padded nodes have zero adjacency rows/cols and
    # zero pooling weight; padded feature/hidden columns are zero everywhere.
    a_pad = _build_adjacency_padded(edge_index, n, n_p, jnp.bfloat16)
    occ = _tile_occupancy(edge_index, n, tm, tk, n_p // tm, n_p // tk)
    x_pad = _pad2d(x, n_p, f_p).astype(jnp.bfloat16)
    w_pad = _pad2d(w, f_p, h_p).astype(jnp.bfloat16)
    b_pad = _pad2d(b, 1, h_p).astype(jnp.float32)
    p_pad = _build_mean_pool_padded(batch, num_graphs, n, b_p, n_p)  # f32

    xw = _xw_matmul(x_pad, w_pad)                              # [Np, Hp] bf16
    partial = _agg_pool(a_pad, xw, b_pad, p_pad, occ, tm, tk)  # [n_i, Bp, Hp]
    out_pad = jnp.sum(partial, axis=0)                         # tiny reduce
    return out_pad[:num_graphs, :h_dim]


class BaseGraphModelPallas:
    """Concrete realization of the abstract BaseGraphModel interface."""

    def __init__(self, in_features: int, hidden: int, key):
        kw, _ = jax.random.split(key)
        scale = 1.0 / jnp.sqrt(jnp.float32(in_features))
        self.w = jax.random.uniform(
            kw, (in_features, hidden), jnp.float32, -scale, scale
        )
        self.b = jnp.zeros((1, hidden), jnp.float32)

    def forward(self, x, edge_index, batch, num_graphs):
        return gcn_forward_pallas(x, edge_index, batch, num_graphs, self.w, self.b)

    def predict(self, x, edge_index, batch, num_graphs):
        return self.forward(x, edge_index, batch, num_graphs)

    def get_subgraph_embedding(self, x, edge_index, batch, num_graphs):
        return self.forward(x, edge_index, batch, num_graphs)

    # TODO(synk): get_loss_function / get_cell_embedding / get_model_specification
    # are abstract with no defined semantics in the base class; not translated.


# ----------------------------------------------------------------------------
# Pure-JAX f32 reference for verification (shares the operator builders)
# ----------------------------------------------------------------------------
def reference_forward(x, edge_index, batch, num_graphs, w, b):
    n = x.shape[0]
    a_hat = _build_adjacency_padded(edge_index, n, n, jnp.float32)
    pool = _build_mean_pool_padded(batch, num_graphs, n, num_graphs, n)
    h = jnp.maximum(a_hat @ (x @ w) + b, 0.0)
    return pool @ h


if __name__ == "__main__":
    key = jax.random.PRNGKey(0)
    k_x, k_model = jax.random.split(key)

    # Small graph batch: 8 nodes, 32 features, hidden 32, 2 graphs.
    N, F, H, B = 8, 32, 32, 2
    x = jax.random.normal(k_x, (N, F), jnp.float32)
    edge_index = jnp.array(
        [[0, 1, 1, 2, 3, 4, 5, 6, 6, 7],
         [1, 0, 2, 1, 0, 5, 4, 7, 5, 6]],
        dtype=jnp.int32,
    )
    batch = jnp.array([0, 0, 0, 0, 1, 1, 1, 1], dtype=jnp.int32)

    model = BaseGraphModelPallas(F, H, k_model)

    out = model.forward(x, edge_index, batch, B)
    out = jax.block_until_ready(out)

    ref = reference_forward(x, edge_index, batch, B, model.w, model.b)
    assert out.shape == (B, H), out.shape
    # bf16 matmul operands with f32 accumulation (pooling in f32) vs f32 ref.
    assert jnp.allclose(out, ref, atol=3e-2, rtol=3e-2), "mismatch vs reference"

    print("KERNEL_OK")
</pallas_src>

<mosaic_0001>
module attributes {stable_mosaic.version = 11 : i64} {
  func.func @_xw_kernel(%arg0: i32, %arg1: i32, %arg2: i32, %arg3: memref<128x128xbf16, #tpu.memory_space<vmem>>, %arg4: memref<128x128xbf16, #tpu.memory_space<vmem>>, %arg5: memref<128x128xbf16, #tpu.memory_space<vmem>>, %arg6: memref<128x128xf32, #tpu.memory_space<vmem>>) attributes {dimension_semantics = [#tpu.dimension_semantics<parallel>, #tpu.dimension_semantics<parallel>, #tpu.dimension_semantics<arbitrary>], iteration_bounds = array<i64: 1, 1, 1>, scalar_prefetch = 0 : i64, scratch_operands = 1 : i64, tpu.core_type = #tpu.core_type<tc>, window_params = [{transform_indices = @transform_0, window_bounds = array<i64: 128, 128>}, {transform_indices = @transform_1, window_bounds = array<i64: 128, 128>}, {transform_indices = @transform_2, window_bounds = array<i64: 128, 128>}]} {
    %c0_i32 = arith.constant 0 : i32
    %0 = arith.cmpi eq, %arg2, %c0_i32 : i32
    %1 = arith.extui %0 : i1 to i32
    %c0_i32_0 = arith.constant 0 : i32
    %2 = arith.cmpi ne, %1, %c0_i32_0 : i32
    scf.if %2 {
      %cst_10 = arith.constant 0.000000e+00 : f32
      %12 = vector.broadcast %cst_10 : f32 to vector<128x128xf32>
      %c0_11 = arith.constant 0 : index
      %c0_12 = arith.constant 0 : index
      %13 = vector.load %arg6[%c0_11, %c0_12] : memref<128x128xf32, #tpu.memory_space<vmem>>, vector<128x128xf32>
      tpu.vector_store %arg6[%c0_11, %c0_12], %12 {strides = array<i32>} : memref<128x128xf32, #tpu.memory_space<vmem>>, vector<128x128xf32>,
    } else {
    }
    %c0 = arith.constant 0 : index
    %c0_1 = arith.constant 0 : index
    %3 = vector.load %arg6[%c0, %c0_1] : memref<128x128xf32, #tpu.memory_space<vmem>>, vector<128x128xf32>
    %c0_2 = arith.constant 0 : index
    %c0_3 = arith.constant 0 : index
    %4 = vector.load %arg3[%c0_2, %c0_3] : memref<128x128xbf16, #tpu.memory_space<vmem>>, vector<128x128xbf16>
    %c0_4 = arith.constant 0 : index
    %c0_5 = arith.constant 0 : index
    %5 = vector.load %arg4[%c0_4, %c0_5] : memref<128x128xbf16, #tpu.memory_space<vmem>>, vector<128x128xbf16>
    %cst = arith.constant dense<0.000000e+00> : vector<128x128xf32>
    %6 = tpu.matmul %4, %5, %cst {dimension_numbers = #tpu.dot_dimension_numbers<[1], [0], [0], [1], [0, 0, 1, 1], [], []>} : vector<128x128xbf16>, vector<128x128xbf16>, vector<128x128xf32> -> vector<128x128xf32>
    %7 = arith.addf %3, %6 : vector<128x128xf32>
    %c0_6 = arith.constant 0 : index
    %c0_7 = arith.constant 0 : index
    %8 = vector.load %arg6[%c0_6, %c0_7] : memref<128x128xf32, #tpu.memory_space<vmem>>, vector<128x128xf32>
    tpu.vector_store %arg6[%c0_6, %c0_7], %7 {strides = array<i32>} : memref<128x128xf32, #tpu.memory_space<vmem>>, vector<128x128xf32>,
    %c0_i32_8 = arith.constant 0 : i32
    %9 = arith.cmpi eq, %arg2, %c0_i32_8 : i32
    %10 = arith.extui %9 : i1 to i32
    %c0_i32_9 = arith.constant 0 : i32
    %11 = arith.cmpi ne, %10, %c0_i32_9 : i32
    scf.if %11 {
      %c0_10 = arith.constant 0 : index
      %c0_11 = arith.constant 0 : index
      %12 = vector.load %arg6[%c0_10, %c0_11] : memref<128x128xf32, #tpu.memory_space<vmem>>, vector<128x128xf32>
      %13 = arith.truncf %12 : vector<128x128xf32> to vector<128x128xbf16>
      %c0_12 = arith.constant 0 : index
      %c0_13 = arith.constant 0 : index
      %14 = vector.load %arg5[%c0_12, %c0_13] : memref<128x128xbf16, #tpu.memory_space<vmem>>, vector<128x128xbf16>
      tpu.vector_store %arg5[%c0_12, %c0_13], %13 {strides = array<i32>} : memref<128x128xbf16, #tpu.memory_space<vmem>>, vector<128x128xbf16>,
    } else {
    }
    return
  }
  func.func @transform_0(%arg0: i32, %arg1: i32, %arg2: i32) -> (i32, i32) {
    %c0_i32 = arith.constant 0 : i32
    return %arg0, %arg2 : i32, i32
  }
  func.func @transform_1(%arg0: i32, %arg1: i32, %arg2: i32) -> (i32, i32) {
    %c0_i32 = arith.constant 0 : i32
    return %arg2, %arg1 : i32, i32
  }
  func.func @transform_2(%arg0: i32, %arg1: i32, %arg2: i32) -> (i32, i32) {
    %c0_i32 = arith.constant 0 : i32
    return %arg0, %arg1 : i32, i32
  }
}

</mosaic_0001>

<bundles_post_ra>
// kernel: tpu_custom_call.1
= control target key start
LH: loop header
LB: loop body
LE: loop exit
PB: predicated region body
PF: predicated region fallthrough
CT: control target
= control target key end

     0   :  { %7 = vsyncpa [#allocation4], 0  ;;  %s632_s0 = inlined_call_operand.hbm [shape: bf16[128,128], index: 0, kind: input, shape index: {}]   ;;  %s633_s1 = inlined_call_operand.hbm [shape: bf16[128,128], index: 1, kind: input, shape index: {}]   ;;  %s634_s2 = inlined_call_operand.hbm [shape: bf16[128,128], index: 2, kind: output, shape index: {}]  }
   0x1   :  { %8 = vsyncpa [#allocation7], 0 }
   0x2   :  { %9 = vsyncpa [#allocation5], 0  ;;  %s14_s11 = sshll.u32 %s632_s0, 4  ;;  %s594_s12 = smov [#allocation3]   ;;  %s15_s11 = int_to_ptr.hbm [resolvable:$true] %s14_s11 }
   0x3   :  { %s16_s13 = sshll.u32 %s594_s12, 4  ;;  %s27_s16 = sshll.u32 %s633_s1, 4  ;;  %s17_s13 = int_to_ptr.vmem [resolvable:$true] %s16_s13  ;;  %s28_s16 = int_to_ptr.hbm [resolvable:$true] %s27_s16 }
   0x4   :  { %s595_s17 = smov 64   ;;  %s596_s18 = smov 4  }
   0x5   :  { %22 = dma.hbm_to_vmem [thread:$0]  %s15_s11, 1024, %s17_s13, [#allocation4], %s595_s17, %s595_s17, %s596_s18  }
   0x6   :  { %s597_s19 = smov [#allocation6]  }
   0x7   :  { %s29_s20 = sshll.u32 %s597_s19, 4  ;;  %s30_s20 = int_to_ptr.vmem [resolvable:$true] %s29_s20 }
   0x8   :  { %35 = dma.hbm_to_vmem [thread:$0]  %s28_s16, 1024, %s30_s20, [#allocation7], %s595_s17, %s595_s17, %s596_s18  }
   0x9   :  { %588 = dma.done.wait [#allocation4], 1024  }
   0xa   :  { %589 = vsyncadd [#allocation4], 4294966272 }
   0xb   :  { %590 = dma.done.wait [#allocation7], 1024  }
   0xc   :  { %591 = vsyncadd [#allocation7], 4294966272  ;;  %v439_v0 = vld [vmem:[#allocation6 + $0x38] sm:$0xff]  ;;  %v438_v1 = vld [vmem:[#allocation6 + $0x30] sm:$0xff]  ;;  %s598_s0 = smov [#allocation8]   ;;  %s346_s23 = sshll.u32 %s634_s2, 4  ;;  %s347_s23 = int_to_ptr.hbm [resolvable:$true] %s346_s23 }
   0xd   :  { %208 = vmatpush.bf16.msra.mxu0 %v439_v0  ;;  %487 = vmatpush.bf16.msra.mxu1 %v439_v0  ;;  %v437_v2 = vld [vmem:[#allocation6 + $0x28] sm:$0xff]  ;;  %v436_v3 = vld [vmem:[#allocation6 + $0x20] sm:$0xff]  ;;  %v435_v4 = vld [vmem:[#allocation6 + $0x18] sm:$0xff]  ;;  %s344_s1 = sshll.u32 %s598_s0, 4  ;;  %s345_s1 = int_to_ptr.vmem [resolvable:$true] %s344_s1 }
   0xe   :  { %488 = vmatpush.bf16.msra.mxu2 %v439_v0  ;;  %489 = vmatpush.bf16.msra.mxu3 %v439_v0  ;;  %v434_v5 = vld [vmem:[#allocation6 + $0x10] sm:$0xff]  ;;  %v433_v6 = vld [vmem:[#allocation6 + $0x8] sm:$0xff]  ;;  %v432_v7 = vld [vmem:[#allocation6] sm:$0xff] }
   0xf   :  { %v424_v8 = vld [vmem:[#allocation3] sm:$0xff]  ;;  %v426_v9 = vld [vmem:[#allocation3 + $0x10] sm:$0xff]  ;;  %v425_v12 = vld [vmem:[#allocation3 + $0x8] sm:$0xff] }
  0x10   :  { %v428_v10 = vld [vmem:[#allocation3 + $0x20] sm:$0xff]  ;;  %v430_v11 = vld [vmem:[#allocation3 + $0x30] sm:$0xff]  ;;  %v427_v13 = vld [vmem:[#allocation3 + $0x18] sm:$0xff] }
  0x11   :  { %209 = vmatpush.bf16.msra.mxu0 %v438_v1  ;;  %490 = vmatpush.bf16.msra.mxu1 %v438_v1  ;;  %v429_v14 = vld [vmem:[#allocation3 + $0x28] sm:$0xff]  ;;  %v431_v15 = vld [vmem:[#allocation3 + $0x38] sm:$0xff] }
  0x12   :  { %491 = vmatpush.bf16.msra.mxu2 %v438_v1  ;;  %492 = vmatpush.bf16.msra.mxu3 %v438_v1 }
  0x15   :  { %210 = vmatpush.bf16.msra.mxu0 %v437_v2  ;;  %493 = vmatpush.bf16.msra.mxu1 %v437_v2 }
  0x16   :  { %494 = vmatpush.bf16.msra.mxu2 %v437_v2  ;;  %495 = vmatpush.bf16.msra.mxu3 %v437_v2 }
  0x19   :  { %211 = vmatpush.bf16.msra.mxu0 %v436_v3  ;;  %496 = vmatpush.bf16.msra.mxu1 %v436_v3 }
  0x1a   :  { %497 = vmatpush.bf16.msra.mxu2 %v436_v3  ;;  %498 = vmatpush.bf16.msra.mxu3 %v436_v3 }
  0x1d   :  { %212 = vmatpush.bf16.msra.mxu0 %v435_v4  ;;  %499 = vmatpush.bf16.msra.mxu1 %v435_v4 }
  0x1e   :  { %500 = vmatpush.bf16.msra.mxu2 %v435_v4  ;;  %501 = vmatpush.bf16.msra.mxu3 %v435_v4 }
  0x21   :  { %213 = vmatpush.bf16.msra.mxu0 %v434_v5  ;;  %502 = vmatpush.bf16.msra.mxu1 %v434_v5 }
  0x22   :  { %503 = vmatpush.bf16.msra.mxu2 %v434_v5  ;;  %504 = vmatpush.bf16.msra.mxu3 %v434_v5 }
  0x25   :  { %214 = vmatpush.bf16.msra.mxu0 %v433_v6  ;;  %505 = vmatpush.bf16.msra.mxu1 %v433_v6 }
  0x26   :  { %506 = vmatpush.bf16.msra.mxu2 %v433_v6  ;;  %507 = vmatpush.bf16.msra.mxu3 %v433_v6 }
  0x29   :  { %215 = vmatpush.bf16.msra.mxu0 %v432_v7  ;;  %508 = vmatpush.bf16.msra.mxu1 %v432_v7 }
  0x2a   :  { %509 = vmatpush.bf16.msra.mxu2 %v432_v7  ;;  %510 = vmatpush.bf16.msra.mxu3 %v432_v7 }
  0x2c   :  { %216 = vmatmul.bf16.vlgmr.msra.gmra.mxu0 %v424_v8  ;;  %226 = vmatmul.bf16.vlgmr.msra.gmra.mxu1 %v426_v9 }
  0x2d   :  { %236 = vmatmul.bf16.vlgmr.msra.gmra.mxu2 %v428_v10  ;;  %246 = vmatmul.bf16.vlgmr.msra.gmra.mxu3 %v430_v11 }
  0x3c   :  { %221 = vmatmul.bf16.gmra.mxu0 %v425_v12  ;;  %231 = vmatmul.bf16.gmra.mxu1 %v427_v13 }
  0x3d   :  { %241 = vmatmul.bf16.gmra.mxu2 %v429_v14  ;;  %251 = vmatmul.bf16.gmra.mxu3 %v431_v15 }
  0xa9   :  { %v217_v16 = vpop.f32.mrf.mxu0  ;;  %v227_v17 = vpop.f32.mrf.mxu1 }
  0xb0   :  { %v237_v18 = vpop.f32.mrf.mxu2  ;;  %v247_v19 = vpop.f32.mrf.mxu3 }
  0xb1   :  { %v219_v20 = vpop.f32.mrf.mxu0  ;;  %v229_v21 = vpop.f32.mrf.mxu1 }
  0xb2   :  { %v443_v22 = vpack.c.bf16 %v219_v20, %v217_v16  ;;  %v453_v23 = vpack.c.bf16 %v229_v21, %v227_v17 }
  0xb4   :  { %444 = vst [vmem:[#allocation8] sm:$0xff] %v443_v22  }
  0xb5   :  { %481 = vst [vmem:[#allocation8 + $0x10] sm:$0xff] %v453_v23  }
  0xb8   :  { %v239_v24 = vpop.f32.mrf.mxu2  ;;  %v249_v25 = vpop.f32.mrf.mxu3 }
  0xb9   :  { %v463_v26 = vpack.c.bf16 %v239_v24, %v237_v18  ;;  %v473_v27 = vpack.c.bf16 %v249_v25, %v247_v19  ;;  %v222_v28 = vpop.f32.mrf.mxu0  ;;  %v232_v29 = vpop.f32.mrf.mxu1 }
  0xbb   :  { %483 = vst [vmem:[#allocation8 + $0x20] sm:$0xff] %v463_v26  }
  0xbc   :  { %485 = vst [vmem:[#allocation8 + $0x30] sm:$0xff] %v473_v27  }
  0xc0   :  { %v242_v30 = vpop.f32.mrf.mxu2  ;;  %v252_v31 = vpop.f32.mrf.mxu3 }
  0xc1   :  { %v224_v32 = vpop.f32.mrf.mxu0  ;;  %v234_v33 = vpop.f32.mrf.mxu1 }
  0xc2   :  { %v448_v34 = vpack.c.bf16 %v224_v32, %v222_v28  ;;  %v458_v35 = vpack.c.bf16 %v234_v33, %v232_v29 }
  0xc4   :  { %480 = vst [vmem:[#allocation8 + $0x8] sm:$0xff] %v448_v34  }
  0xc5   :  { %482 = vst [vmem:[#allocation8 + $0x18] sm:$0xff] %v458_v35  }
  0xc8   :  { %v244_v36 = vpop.f32.mrf.mxu2  ;;  %v254_v37 = vpop.f32.mrf.mxu3 }
  0xc9   :  { %v468_v38 = vpack.c.bf16 %v244_v36, %v242_v30  ;;  %v478_v39 = vpack.c.bf16 %v254_v37, %v252_v31 }
  0xcb   :  { %484 = vst [vmem:[#allocation8 + $0x28] sm:$0xff] %v468_v38  }
  0xcc   :  { %486 = vst [vmem:[#allocation8 + $0x38] sm:$0xff] %v478_v39  }
  0xcd   :  { %352 = dma.vmem_to_hbm [thread:$0]  %s345_s1, 1024, %s347_s23, [#allocation5], %s595_s17, %s595_s17, %s596_s18  }
  0xce   :  { %592 = dma.done.wait [#allocation5], 1024  }
  0xcf   :  { %593 = vsyncadd [#allocation5], 4294966272 }
  0xd0   :  { %357 = vsyncpa [#allocation4], 1 }
  0xd1   :  { %358 = vsyncpa [#allocation7], 1 }
  0xd2   :  { %359 = vsyncpa [#allocation5], 1 }

</bundles_post_ra>
